<compile_context>
chip_gen: v6e
topology: v6e:2x2x1
jax: 0.10.0
libtpu: 0.0.40
codegen_flags: <defaults>
</compile_context>

<pallas_src>
import functools

import jax
import jax.numpy as jnp
from jax.experimental import pallas as pl
from jax.experimental.pallas import tpu as pltpu


def _round_up(x, m):
    return (x + m - 1) // m * m


# --------------------------------------------------------------------------
# Kernels
# --------------------------------------------------------------------------
def _ffn_kernel_fused(x_ref, w1_ref, b1_ref, w2_ref, b2_ref, gamma_ref,
                      beta_ref, o_ref, *, eps):
    """Whole hidden dim resident in VMEM; single 'rows' grid axis."""
    x = x_ref[...]
    h = jnp.dot(x, w1_ref[...], preferred_element_type=jnp.float32)
    h = jnp.maximum(h + b1_ref[...], 0.0)
    y = jnp.dot(h.astype(w2_ref.dtype), w2_ref[...],
                preferred_element_type=jnp.float32)
    # TODO(synk): dropout is identity in eval mode; training-mode masking would
    # use pltpu.prng_seed / pltpu.prng_random_bits before the residual add.
    y = y + b2_ref[...] + x.astype(jnp.float32)
    mean = jnp.mean(y, axis=-1, keepdims=True)
    centered = y - mean
    var = jnp.mean(centered * centered, axis=-1, keepdims=True)
    inv = jax.lax.rsqrt(var + eps)
    o_ref[...] = (centered * inv * gamma_ref[...] + beta_ref[...]).astype(o_ref.dtype)


def _ffn_kernel_split(x_ref, w1_ref, b1_ref, w2_ref, b2_ref, gamma_ref,
                      beta_ref, o_ref, acc_ref, *, eps):
    """Hidden dim tiled on grid axis 1; f32 accumulator scratch in VMEM."""
    k = pl.program_id(1)

    h = jnp.dot(x_ref[...], w1_ref[...], preferred_element_type=jnp.float32)
    h = jnp.maximum(h + b1_ref[...], 0.0)
    part = jnp.dot(h.astype(w2_ref.dtype), w2_ref[...],
                   preferred_element_type=jnp.float32)

    # Assign on the first k step (saves a full (tm, d_in) f32 zero-init pass),
    # accumulate afterwards.
    @pl.when(k == 0)
    def _():
        acc_ref[...] = part

    @pl.when(k != 0)
    def _():
        acc_ref[...] += part

    # TODO(synk): dropout is identity in eval mode (training would mask here).
    @pl.when(k == pl.num_programs(1) - 1)
    def _():
        y = acc_ref[...] + b2_ref[...] + x_ref[...].astype(jnp.float32)
        mean = jnp.mean(y, axis=-1, keepdims=True)
        centered = y - mean
        var = jnp.mean(centered * centered, axis=-1, keepdims=True)
        inv = jax.lax.rsqrt(var + eps)
        o_ref[...] = (centered * inv * gamma_ref[...] + beta_ref[...]).astype(o_ref.dtype)


# --------------------------------------------------------------------------
# Tiling / budgeting helpers
# --------------------------------------------------------------------------
def _tpu_defaults():
    """Per-generation defaults: (tm, tk, vmem budget bytes, #TensorCores)."""
    vmem_bytes = 128 << 20
    try:
        vmem_bytes = int(pltpu.get_tpu_info().vmem_capacity_bytes)
    except Exception:
        pass
    if vmem_bytes <= (64 << 20):
        # v7x-class: 64 MiB VMEM per TC, 2 TensorCores per chip.  Leave ~20%
        # headroom for Mosaic internal scratch / DMA descriptors.
        return dict(tm=512, tk=256, budget=int(0.8 * vmem_bytes), n_cores=2)
    # v5e / v6e: 128 MiB VMEM, single TensorCore.
    return dict(tm=1024, tk=512, budget=100 << 20, n_cores=1)


def _pick_tk(d_hid_p, cap):
    """Largest multiple of 128 <= cap that divides d_hid_p (itself % 128 == 0)."""
    cap = max(128, min(cap, d_hid_p))
    t = (cap // 128) * 128
    while d_hid_p % t != 0:
        t -= 128
    return t


def _vmem_estimate(tm, tk, d_in, x_bytes, o_bytes, w_bytes):
    """Conservative per-step VMEM footprint (double-buffered operands)."""
    v = 2 * tm * d_in * x_bytes            # x row tile
    v += 2 * tm * d_in * o_bytes           # out row tile
    v += 2 * 2 * d_in * tk * w_bytes       # W1^T and W2^T slabs
    v += tm * tk * (4 + w_bytes)           # f32 h intermediate + cast copy
    v += tm * d_in * 4                     # f32 y / accumulator
    v += 8 * max(d_in, tk) * 4             # biases / gamma / beta (small)
    return v


# --------------------------------------------------------------------------
# Parameter preparation (one-time, init-style; not per forward call)
# --------------------------------------------------------------------------
def prepare_ffn_params(w1, b1, w2, b2, gamma, beta):
    """Takes PyTorch-convention parameters:
         w1: (d_hid, d_in), b1: (d_hid,)
         w2: (d_in, d_hid), b2: (d_in,)
         gamma/beta: (d_in,)
       Returns kernel-ready tensors (transposed weights, f32 vectors, hidden
       dim zero-padded to a multiple of 128).  Do this once at module init so
       no per-call HBM round trip for the transposes is needed.
    """
    d_hid, d_in = w1.shape
    w1_t = jnp.asarray(w1).T                                   # (d_in, d_hid)
    w2_t = jnp.asarray(w2).T                                   # (d_hid, d_in)
    b1_2 = jnp.asarray(b1).reshape(1, d_hid).astype(jnp.float32)
    b2_2 = jnp.asarray(b2).reshape(1, d_in).astype(jnp.float32)
    g_2 = jnp.asarray(gamma).reshape(1, d_in).astype(jnp.float32)
    be_2 = jnp.asarray(beta).reshape(1, d_in).astype(jnp.float32)

    d_hid_p = _round_up(d_hid, 128)
    if d_hid_p != d_hid:
        # Zero-padded hidden units: relu(x @ 0 + 0) = 0, and their W2 rows are
        # zero, so the padded computation is exact.
        w1_t = jnp.pad(w1_t, ((0, 0), (0, d_hid_p - d_hid)))
        b1_2 = jnp.pad(b1_2, ((0, 0), (0, d_hid_p - d_hid)))
        w2_t = jnp.pad(w2_t, ((0, d_hid_p - d_hid), (0, 0)))
    return (w1_t, b1_2, w2_t, b2_2, g_2, be_2)


# --------------------------------------------------------------------------
# Forward
# --------------------------------------------------------------------------
def positionwise_feed_forward(x, params, *, eps=1e-6, tm=None, tk=None,
                              weight_resident=None):
    """x: (batch, seq, d_in).  params: output of prepare_ffn_params."""
    w1_t, b1_2, w2_t, b2_2, g_2, be_2 = params
    B, S, d_in = x.shape
    d_hid_p = w1_t.shape[1]
    rows = B * S

    cfg = _tpu_defaults()
    budget = cfg["budget"]
    if tm is None:
        tm = cfg["tm"]
    if tk is None:
        tk = cfg["tk"]

    x_bytes = x.dtype.itemsize
    w_bytes = w1_t.dtype.itemsize

    # Row tile: as large as the budget allows, multiple of 8 (sublanes), and
    # clamped so multi-TensorCore parts get at least n_cores row tiles to
    # shard across the "parallel" axis.
    tm = max(8, min(tm, _round_up(pl.cdiv(rows, cfg["n_cores"]), 8)))
    tm = _round_up(tm, 8)

    # Keep the whole hidden dim resident when it fits the VMEM budget
    # (weights DMA'd once per call -> only x / out hit HBM per row tile).
    if weight_resident is None:
        weight_resident = (
            _vmem_estimate(tm, d_hid_p, d_in, x_bytes, x_bytes, w_bytes) <= budget)
    tk = d_hid_p if weight_resident else _pick_tk(d_hid_p, tk)

    # Shrink tiles until the conservative VMEM estimate fits the budget
    # (robustness for large d_in/d_hid, esp. v7x's 64 MiB VMEM).
    while _vmem_estimate(tm, tk, d_in, x_bytes, x_bytes, w_bytes) > budget:
        if tk > 128:
            tk = _pick_tk(d_hid_p, tk - 128)
        elif tm > 8:
            tm = max(8, _round_up(tm // 2, 8))
        else:
            break
    if tk != d_hid_p:
        weight_resident = False
    n_k = d_hid_p // tk

    x2 = x.reshape(rows, d_in)
    n_rows = pl.cdiv(rows, tm)  # partial edge block handled by Pallas masking

    if weight_resident and n_k == 1:
        out2 = pl.pallas_call(
            functools.partial(_ffn_kernel_fused, eps=eps),
            out_shape=jax.ShapeDtypeStruct((rows, d_in), x.dtype),
            grid_spec=pltpu.PrefetchScalarGridSpec(
                num_scalar_prefetch=0,
                grid=(n_rows,),
                in_specs=[
                    pl.BlockSpec((tm, d_in), lambda i: (i, 0)),       # x tile
                    pl.BlockSpec((d_in, d_hid_p), lambda i: (0, 0)),  # W1^T (resident)
                    pl.BlockSpec((1, d_hid_p), lambda i: (0, 0)),     # b1
                    pl.BlockSpec((d_hid_p, d_in), lambda i: (0, 0)),  # W2^T (resident)
                    pl.BlockSpec((1, d_in), lambda i: (0, 0)),        # b2
                    pl.BlockSpec((1, d_in), lambda i: (0, 0)),        # gamma
                    pl.BlockSpec((1, d_in), lambda i: (0, 0)),        # beta
                ],
                out_specs=pl.BlockSpec((tm, d_in), lambda i: (i, 0)),
            ),
            compiler_params=pltpu.CompilerParams(
                dimension_semantics=("parallel",),
                vmem_limit_bytes=int(budget),
            ),
        )(x2, w1_t, b1_2, w2_t, b2_2, g_2, be_2)
    else:
        out2 = pl.pallas_call(
            functools.partial(_ffn_kernel_split, eps=eps),
            out_shape=jax.ShapeDtypeStruct((rows, d_in), x.dtype),
            grid_spec=pltpu.PrefetchScalarGridSpec(
                num_scalar_prefetch=0,
                grid=(n_rows, n_k),                # reduction axis last
                in_specs=[
                    pl.BlockSpec((tm, d_in), lambda i, k: (i, 0)),    # x tile
                    pl.BlockSpec((d_in, tk), lambda i, k: (0, k)),    # W1^T slab
                    pl.BlockSpec((1, tk), lambda i, k: (0, k)),       # b1 slab
                    pl.BlockSpec((tk, d_in), lambda i, k: (k, 0)),    # W2^T slab
                    pl.BlockSpec((1, d_in), lambda i, k: (0, 0)),     # b2
                    pl.BlockSpec((1, d_in), lambda i, k: (0, 0)),     # gamma
                    pl.BlockSpec((1, d_in), lambda i, k: (0, 0)),     # beta
                ],
                out_specs=pl.BlockSpec((tm, d_in), lambda i, k: (i, 0)),
                scratch_shapes=[pltpu.VMEM((tm, d_in), jnp.float32)],
            ),
            compiler_params=pltpu.CompilerParams(
                dimension_semantics=("parallel", "arbitrary"),
                vmem_limit_bytes=int(budget),
            ),
        )(x2, w1_t, b1_2, w2_t, b2_2, g_2, be_2)

    return out2.reshape(B, S, d_in)


# --------------------------------------------------------------------------
# Reference + test
# --------------------------------------------------------------------------
def _reference(x, w1, b1, w2, b2, gamma, beta, eps=1e-6):
    h = jnp.maximum(x @ w1.T + b1, 0.0)
    y = h @ w2.T + b2
    y = y + x
    mean = jnp.mean(y, axis=-1, keepdims=True)
    var = jnp.mean((y - mean) ** 2, axis=-1, keepdims=True)
    return (y - mean) / jnp.sqrt(var + eps) * gamma + beta


def _make_case(key, B, S, d_in, d_hid):
    kx, k1, kb1, k2, kb2 = jax.random.split(key, 5)
    x = jax.random.normal(kx, (B, S, d_in), dtype=jnp.float32)
    w1 = jax.random.normal(k1, (d_hid, d_in), dtype=jnp.float32) * 0.1
    b1 = jax.random.normal(kb1, (d_hid,), dtype=jnp.float32) * 0.1
    w2 = jax.random.normal(k2, (d_in, d_hid), dtype=jnp.float32) * 0.1
    b2 = jax.random.normal(kb2, (d_in,), dtype=jnp.float32) * 0.1
    gamma = jnp.ones((d_in,), dtype=jnp.float32)
    beta = jnp.zeros((d_in,), dtype=jnp.float32)
    return x, (w1, b1, w2, b2, gamma, beta)


if __name__ == "__main__":
    key = jax.random.PRNGKey(0)
    k_a, k_b = jax.random.split(key)

    cases = [
        # Lane-dense, divides everything: exercises the weight-resident path
        # and the hidden-tiled accumulator path.
        ("aligned", _make_case(k_a, B=2, S=8, d_in=128, d_hid=256)),
        # Awkward shapes: rows not a multiple of the row tile (partial edge
        # block, no wrapper padding) and d_hid not a multiple of 128
        # (one-time zero padding of the hidden dim).
        ("ragged", _make_case(k_b, B=2, S=7, d_in=256, d_hid=192)),
    ]

    for name, (x, raw) in cases:
        w1, b1, w2, b2, gamma, beta = raw
        params = prepare_ffn_params(w1, b1, w2, b2, gamma, beta)
        ref = _reference(x, w1, b1, w2, b2, gamma, beta)

        # Auto path (weights resident in VMEM for these small shapes).
        out = jax.block_until_ready(positionwise_feed_forward(x, params))
        assert out.shape == x.shape
        err = float(jnp.max(jnp.abs(out - ref)))
        assert jnp.allclose(out, ref, atol=1e-4, rtol=1e-4), (name, "fused", err)

        # Forced hidden-dim-tiled path (exercises the accumulator kernel).
        out_s = jax.block_until_ready(
            positionwise_feed_forward(x, params, tk=128, weight_resident=False))
        err_s = float(jnp.max(jnp.abs(out_s - ref)))
        assert jnp.allclose(out_s, ref, atol=1e-4, rtol=1e-4), (name, "split", err_s)

    print("KERNEL_OK")
</pallas_src>

<mosaic_0001>
module attributes {stable_mosaic.version = 11 : i64} {
  func.func @_ffn_kernel_fused(%arg0: i32, %arg1: memref<16x128xf32, #tpu.memory_space<vmem>>, %arg2: memref<128x256xf32, #tpu.memory_space<vmem>>, %arg3: memref<1x256xf32, #tpu.memory_space<vmem>>, %arg4: memref<256x128xf32, #tpu.memory_space<vmem>>, %arg5: memref<1x128xf32, #tpu.memory_space<vmem>>, %arg6: memref<1x128xf32, #tpu.memory_space<vmem>>, %arg7: memref<1x128xf32, #tpu.memory_space<vmem>>, %arg8: memref<16x128xf32, #tpu.memory_space<vmem>>) attributes {dimension_semantics = [#tpu.dimension_semantics<parallel>], iteration_bounds = array<i64: 1>, scalar_prefetch = 0 : i64, scratch_operands = 0 : i64, tpu.core_type = #tpu.core_type<tc>, window_params = [{transform_indices = @transform_0, window_bounds = array<i64: 16, 128>}, {pipeline_mode = #tpu.pipeline_mode<synchronous>, transform_indices = @transform_1, window_bounds = array<i64: 128, 256>}, {pipeline_mode = #tpu.pipeline_mode<synchronous>, transform_indices = @transform_2, window_bounds = array<i64: 1, 256>}, {pipeline_mode = #tpu.pipeline_mode<synchronous>, transform_indices = @transform_3, window_bounds = array<i64: 256, 128>}, {pipeline_mode = #tpu.pipeline_mode<synchronous>, transform_indices = @transform_4, window_bounds = array<i64: 1, 128>}, {pipeline_mode = #tpu.pipeline_mode<synchronous>, transform_indices = @transform_5, window_bounds = array<i64: 1, 128>}, {pipeline_mode = #tpu.pipeline_mode<synchronous>, transform_indices = @transform_6, window_bounds = array<i64: 1, 128>}, {transform_indices = @transform_7, window_bounds = array<i64: 16, 128>}]} {
    %c0 = arith.constant 0 : index
    %c0_0 = arith.constant 0 : index
    %0 = vector.load %arg1[%c0, %c0_0] : memref<16x128xf32, #tpu.memory_space<vmem>>, vector<16x128xf32>
    %c0_1 = arith.constant 0 : index
    %c0_2 = arith.constant 0 : index
    %1 = vector.load %arg2[%c0_1, %c0_2] : memref<128x256xf32, #tpu.memory_space<vmem>>, vector<128x256xf32>
    %cst = arith.constant dense<0.000000e+00> : vector<16x256xf32>
    %2 = tpu.matmul %0, %1, %cst {dimension_numbers = #tpu.dot_dimension_numbers<[1], [0], [0], [1], [0, 0, 1, 1], [], []>} : vector<16x128xf32>, vector<128x256xf32>, vector<16x256xf32> -> vector<16x256xf32>
    %c0_3 = arith.constant 0 : index
    %c0_4 = arith.constant 0 : index
    %3 = vector.load %arg3[%c0_3, %c0_4] : memref<1x256xf32, #tpu.memory_space<vmem>>, vector<1x256xf32>
    %4 = vector.broadcast %3 : vector<1x256xf32> to vector<16x256xf32>
    %5 = arith.addf %2, %4 : vector<16x256xf32>
    %cst_5 = arith.constant 0.000000e+00 : f32
    %6 = vector.broadcast %cst_5 : f32 to vector<16x256xf32>
    %7 = arith.maximumf %5, %6 : vector<16x256xf32>
    %c0_6 = arith.constant 0 : index
    %c0_7 = arith.constant 0 : index
    %8 = vector.load %arg4[%c0_6, %c0_7] : memref<256x128xf32, #tpu.memory_space<vmem>>, vector<256x128xf32>
    %cst_8 = arith.constant dense<0.000000e+00> : vector<16x128xf32>
    %9 = tpu.matmul %7, %8, %cst_8 {dimension_numbers = #tpu.dot_dimension_numbers<[1], [0], [0], [1], [0, 0, 1, 1], [], []>} : vector<16x256xf32>, vector<256x128xf32>, vector<16x128xf32> -> vector<16x128xf32>
    %c0_9 = arith.constant 0 : index
    %c0_10 = arith.constant 0 : index
    %10 = vector.load %arg5[%c0_9, %c0_10] : memref<1x128xf32, #tpu.memory_space<vmem>>, vector<1x128xf32>
    %11 = vector.broadcast %10 : vector<1x128xf32> to vector<16x128xf32>
    %12 = arith.addf %9, %11 : vector<16x128xf32>
    %13 = arith.addf %12, %0 : vector<16x128xf32>
    %cst_11 = arith.constant dense<0.000000e+00> : vector<16xf32>
    %14 = vector.multi_reduction <add>, %13, %cst_11 [1] : vector<16x128xf32> to vector<16xf32>
    %15 = vector.shape_cast %14 : vector<16xf32> to vector<16x1xf32>
    %cst_12 = arith.constant 1.280000e+02 : f32
    %16 = vector.broadcast %cst_12 : f32 to vector<16x1xf32>
    %17 = arith.divf %15, %16 : vector<16x1xf32>
    %18 = vector.broadcast %17 : vector<16x1xf32> to vector<16x128xf32>
    %19 = arith.subf %13, %18 : vector<16x128xf32>
    %20 = arith.mulf %19, %19 : vector<16x128xf32>
    %cst_13 = arith.constant dense<0.000000e+00> : vector<16xf32>
    %21 = vector.multi_reduction <add>, %20, %cst_13 [1] : vector<16x128xf32> to vector<16xf32>
    %22 = vector.shape_cast %21 : vector<16xf32> to vector<16x1xf32>
    %cst_14 = arith.constant 1.280000e+02 : f32
    %23 = vector.broadcast %cst_14 : f32 to vector<16x1xf32>
    %24 = arith.divf %22, %23 : vector<16x1xf32>
    %cst_15 = arith.constant 9.99999997E-7 : f32
    %25 = vector.broadcast %cst_15 : f32 to vector<16x1xf32>
    %26 = arith.addf %24, %25 : vector<16x1xf32>
    %27 = math.rsqrt %26 : vector<16x1xf32>
    %28 = vector.broadcast %27 : vector<16x1xf32> to vector<16x128xf32>
    %29 = arith.mulf %19, %28 : vector<16x128xf32>
    %c0_16 = arith.constant 0 : index
    %c0_17 = arith.constant 0 : index
    %30 = vector.load %arg6[%c0_16, %c0_17] : memref<1x128xf32, #tpu.memory_space<vmem>>, vector<1x128xf32>
    %31 = vector.broadcast %30 : vector<1x128xf32> to vector<16x128xf32>
    %32 = arith.mulf %29, %31 : vector<16x128xf32>
    %c0_18 = arith.constant 0 : index
    %c0_19 = arith.constant 0 : index
    %33 = vector.load %arg7[%c0_18, %c0_19] : memref<1x128xf32, #tpu.memory_space<vmem>>, vector<1x128xf32>
    %34 = vector.broadcast %33 : vector<1x128xf32> to vector<16x128xf32>
    %35 = arith.addf %32, %34 : vector<16x128xf32>
    %c0_20 = arith.constant 0 : index
    %c0_21 = arith.constant 0 : index
    %36 = vector.load %arg8[%c0_20, %c0_21] : memref<16x128xf32, #tpu.memory_space<vmem>>, vector<16x128xf32>
    tpu.vector_store %arg8[%c0_20, %c0_21], %35 {strides = array<i32>} : memref<16x128xf32, #tpu.memory_space<vmem>>, vector<16x128xf32>,
    return
  }
  func.func @transform_0(%arg0: i32) -> (i32, i32) {
    %c0_i32 = arith.constant 0 : i32
    %c0_i32_0 = arith.constant 0 : i32
    return %arg0, %c0_i32 : i32, i32
  }
  func.func @transform_1(%arg0: i32) -> (i32, i32) {
    %c0_i32 = arith.constant 0 : i32
    %c0_i32_0 = arith.constant 0 : i32
    %c0_i32_1 = arith.constant 0 : i32
    return %c0_i32, %c0_i32_0 : i32, i32
  }
  func.func @transform_2(%arg0: i32) -> (i32, i32) {
    %c0_i32 = arith.constant 0 : i32
    %c0_i32_0 = arith.constant 0 : i32
    %c0_i32_1 = arith.constant 0 : i32
    return %c0_i32, %c0_i32_0 : i32, i32
  }
  func.func @transform_3(%arg0: i32) -> (i32, i32) {
    %c0_i32 = arith.constant 0 : i32
    %c0_i32_0 = arith.constant 0 : i32
    %c0_i32_1 = arith.constant 0 : i32
    return %c0_i32, %c0_i32_0 : i32, i32
  }
  func.func @transform_4(%arg0: i32) -> (i32, i32) {
    %c0_i32 = arith.constant 0 : i32
    %c0_i32_0 = arith.constant 0 : i32
    %c0_i32_1 = arith.constant 0 : i32
    return %c0_i32, %c0_i32_0 : i32, i32
  }
  func.func @transform_5(%arg0: i32) -> (i32, i32) {
    %c0_i32 = arith.constant 0 : i32
    %c0_i32_0 = arith.constant 0 : i32
    %c0_i32_1 = arith.constant 0 : i32
    return %c0_i32, %c0_i32_0 : i32, i32
  }
  func.func @transform_6(%arg0: i32) -> (i32, i32) {
    %c0_i32 = arith.constant 0 : i32
    %c0_i32_0 = arith.constant 0 : i32
    %c0_i32_1 = arith.constant 0 : i32
    return %c0_i32, %c0_i32_0 : i32, i32
  }
  func.func @transform_7(%arg0: i32) -> (i32, i32) {
    %c0_i32 = arith.constant 0 : i32
    %c0_i32_0 = arith.constant 0 : i32
    return %arg0, %c0_i32 : i32, i32
  }
}

</mosaic_0001>

<bundles_post_ra>
// kernel: tpu_custom_call.1
= control target key start
LH: loop header
LB: loop body
LE: loop exit
PB: predicated region body
PF: predicated region fallthrough
CT: control target
= control target key end

     0   :  { %12 = vsyncpa [#allocation3], 0  ;;  %s600_s0 = inlined_call_operand.hbm [shape: f32[16,128], index: 0, kind: input, shape index: {}]   ;;  %s601_s1 = inlined_call_operand.hbm [shape: f32[128,256], index: 1, kind: input, shape index: {}]   ;;  %s602_s2 = inlined_call_operand.vmem [shape: f32[1,256], index: 2, kind: input, shape index: {}]   ;;  %s603_s3 = inlined_call_operand.hbm [shape: f32[256,128], index: 3, kind: input, shape index: {}]   ;;  %s604_s4 = inlined_call_operand.vmem [shape: f32[1,128], index: 4, kind: input, shape index: {}]   ;;  %s605_s5 = inlined_call_operand.vmem [shape: f32[1,128], index: 5, kind: input, shape index: {}]   ;;  %s606_s6 = inlined_call_operand.vmem [shape: f32[1,128], index: 6, kind: input, shape index: {}]   ;;  %s607_s7 = inlined_call_operand.hbm [shape: f32[16,128], index: 7, kind: output, shape index: {}]  }
   0x1   :  { %13 = vsyncpa [#allocation6], 0 }
   0x2   :  { %14 = vsyncpa [#allocation4], 0  ;;  %s512_s24 = smov [#allocation5]  }
   0x3   :  { %s32_s25 = sshll.u32 %s512_s24, 4  ;;  %s33_s25 = int_to_ptr.vmem [resolvable:$true] %s32_s25 }
   0x4   :  { %s434_s26 = scalar_lea.vmem %s33_s25, 4096  ;;  %p439_p1 = scmp.lt.s32.totalorder %s33_s25, %s33_s25 }
   0x5   :  { %p435_p0 = scmp.ne.s32.totalorder %s33_s25, %s434_s26  ;;  %p440_p2 = scmp.lt.s32.totalorder %s434_s26, %s434_s26 }
   0x7   :  { %p441_p3 = por %p440_p2, %p439_p1 }
   0x9   :  { %p442_p4 = pnand %p441_p3, %p435_p0 }
   0xb   :  { %445 = shalt.err (!%p442_p4)
}
   0xc   :  { %s513_s27 = smov 256   ;;  %s514_s28 = smov 16  }
   0xd   :  { %38 = dma.hbm_to_vmem [thread:$0]  %s601_s1, 4096, %s33_s25, [#allocation6], %s513_s27, %s513_s27, %s514_s28  }
   0xe   :  { %s515_s8 = smov [#allocation2]  }
   0xf   :  { %s20_s9 = sshll.u32 %s515_s8, 4  ;;  %s21_s9 = int_to_ptr.vmem [resolvable:$true] %s20_s9 }
  0x10   :  { %s454_s10 = scalar_lea.vmem %s21_s9, 256  ;;  %p459_p6 = scmp.lt.s32.totalorder %s21_s9, %s21_s9 }
  0x11   :  { %p455_p5 = scmp.ne.s32.totalorder %s21_s9, %s454_s10  ;;  %p460_p7 = scmp.lt.s32.totalorder %s454_s10, %s454_s10 }
  0x13   :  { %p461_p8 = por %p460_p7, %p459_p6 }
  0x15   :  { %p462_p9 = pnand %p461_p8, %p455_p5 }
  0x17   :  { %465 = shalt.err (!%p462_p9)
}
  0x18   :  { %s516_s11 = smov 128   ;;  %s517_s12 = smov 8  }
  0x19   :  { %26 = dma.hbm_to_vmem [thread:$0]  %s600_s0, 256, %s21_s9, [#allocation3], %s516_s11, %s516_s11, %s517_s12  }
  0x1a   :  { %s518_s1 = smov [#allocation7]  }
  0x1b   :  { %s46_s15 = sshll.u32 %s518_s1, 4  ;;  %s47_s15 = int_to_ptr.vmem [resolvable:$true] %s46_s15 }
  0x1c   :  { %s474_s16 = scalar_lea.vmem %s47_s15, 4096  ;;  %p479_p11 = scmp.lt.s32.totalorder %s47_s15, %s47_s15 }
  0x1d   :  { %p475_p10 = scmp.ne.s32.totalorder %s47_s15, %s474_s16  ;;  %p480_p12 = scmp.lt.s32.totalorder %s474_s16, %s474_s16 }
  0x1f   :  { %p481_p13 = por %p480_p12, %p479_p11 }
  0x21   :  { %p482_p0 = pnand %p481_p13, %p475_p10 }
  0x23   :  { %485 = shalt.err (!%p482_p0)
}
  0x24   :  { %52 = dma.hbm_to_vmem [thread:$0]  %s603_s3, 4096, %s47_s15, [#allocation6], %s516_s11, %s516_s11, %s517_s12  }
  0x25   :  { %506 = dma.done.wait [#allocation3], 256  }
  0x26   :  { %507 = vsyncadd [#allocation3], 4294967040 }
  0x27   :  { %508 = dma.done.wait [#allocation6], 8192  }
  0x28   :  { %509 = vsyncadd [#allocation6], 4294959104  ;;  %v519_v0 = vmov 0.0   ;;  %v101_v1 = vld [vmem:[#allocation5 + $0xf8] sm:$0xff]  ;;  %v100_v2 = vld [vmem:[#allocation5 + $0xf0] sm:$0xff]  ;;  %s520_s23 = smov [#allocation8]  }
  0x29   :  { %178 = vmatprep.mubr.f32.mxu0 %v519_v0  ;;  %v99_v3 = vld [vmem:[#allocation5 + $0xe8] sm:$0xff]  ;;  %114 = vmatprep.subr.mxu0 %v101_v1  ;;  %v98_v4 = vld [vmem:[#allocation5 + $0xe0] sm:$0xff]  ;;  %v97_v5 = vld [vmem:[#allocation5 + $0xd8] sm:$0xff]  ;;  %s359_s24 = sshll.u32 %s520_s23, 4  ;;  %s360_s24 = int_to_ptr.vmem [resolvable:$true] %s359_s24 }
  0x2a   :  { %115 = vmatpush1.msra.mxu0 %v100_v2  ;;  %v96_v6 = vld [vmem:[#allocation5 + $0xd0] sm:$0xff]  ;;  %v95_v7 = vld [vmem:[#allocation5 + $0xc8] sm:$0xff]  ;;  %v94_v8 = vld [vmem:[#allocation5 + $0xc0] sm:$0xff]  ;;  %s486_s25 = scalar_lea.vmem %s360_s24, 256  ;;  %p491_p2 = scmp.lt.s32.totalorder %s360_s24, %s360_s24 }
  0x2b   :  { %116 = vmatprep.subr.mxu0 %v99_v3  ;;  %v93_v9 = vld [vmem:[#allocation5 + $0xb8] sm:$0xff]  ;;  %v92_v10 = vld [vmem:[#allocation5 + $0xb0] sm:$0xff]  ;;  %v91_v11 = vld [vmem:[#allocation5 + $0xa8] sm:$0xff]  ;;  %p487_p1 = scmp.ne.s32.totalorder %s360_s24, %s486_s25  ;;  %p492_p3 = scmp.lt.s32.totalorder %s486_s25, %s486_s25 }
  0x2c   :  { %117 = vmatpush1.msra.mxu0 %v98_v4  ;;  %v90_v12 = vld [vmem:[#allocation5 + $0xa0] sm:$0xff]  ;;  %v89_v13 = vld [vmem:[#allocation5 + $0x98] sm:$0xff]  ;;  %v88_v14 = vld [vmem:[#allocation5 + $0x90] sm:$0xff] }
  0x2d   :  { %118 = vmatprep.subr.mxu0 %v97_v5  ;;  %v226_v15 = vld [vmem:[#allocation7 + $0xf8] sm:$0xff]  ;;  %v87_v17 = vld [vmem:[#allocation5 + $0x88] sm:$0xff]  ;;  %v225_v18 = vld [vmem:[#allocation7 + $0xf0] sm:$0xff]  ;;  %p493_p4 = por %p492_p3, %p491_p2 }
  0x2e   :  { %119 = vmatpush1.msra.mxu0 %v96_v6  ;;  %v210_v16 = vld [vmem:[#allocation7 + $0x78] sm:$0xff]  ;;  %375 = vmatprep.subr.mxu1 %v226_v15  ;;  %v209_v19 = vld [vmem:[#allocation7 + $0x70] sm:$0xff]  ;;  %v86_v20 = vld [vmem:[#allocation5 + $0x80] sm:$0xff] }
  0x2f   :  { %120 = vmatprep.subr.mxu0 %v95_v7  ;;  %376 = vmatpush3.msra.mxu1 %v210_v16  ;;  %v224_v21 = vld [vmem:[#allocation7 + $0xe8] sm:$0xff]  ;;  %v85_v22 = vld [vmem:[#allocation5 + $0x78] sm:$0xff]  ;;  %v84_v24 = vld [vmem:[#allocation5 + $0x70] sm:$0xff]  ;;  %p494_p5 = pnand %p493_p4, %p487_p1 }
  0x30   :  { %121 = vmatpush1.msra.mxu0 %v94_v8  ;;  %377 = vmatprep.subr.mxu1 %v225_v18  ;;  %v208_v23 = vld [vmem:[#allocation7 + $0x68] sm:$0xff]  ;;  %v223_v25 = vld [vmem:[#allocation7 + $0xe0] sm:$0xff]  ;;  %v222_v29 = vld [vmem:[#allocation7 + $0xd8] sm:$0xff] }
  0x31   :  { %122 = vmatprep.subr.mxu0 %v93_v9  ;;  %378 = vmatpush3.msra.mxu1 %v209_v19  ;;  %v83_v26 = vld [vmem:[#allocation5 + $0x68] sm:$0xff]  ;;  %v207_v27 = vld [vmem:[#allocation7 + $0x60] sm:$0xff]  ;;  %v81_v30 = vld [vmem:[#allocation5 + $0x58] sm:$0xff] }
  0x32   :  { %123 = vmatpush1.msra.mxu0 %v92_v10  ;;  %379 = vmatprep.subr.mxu1 %v224_v21  ;;  %v82_v28 = vld [vmem:[#allocation5 + $0x60] sm:$0xff]  ;;  %v206_v31 = vld [vmem:[#allocation7 + $0x58] sm:$0xff]  ;;  %v80_v32 = vld [vmem:[#allocation5 + $0x50] sm:$0xff] }
  0x33   :  { %124 = vmatprep.subr.mxu0 %v91_v11  ;;  %380 = vmatpush3.msra.mxu1 %v208_v23  ;;  %v221_v33 = vld [vmem:[#allocation7 + $0xd0] sm:$0xff]  ;;  %v79_v34 = vld [vmem:[#allocation5 + $0x48] sm:$0xff]  ;;  %v78_v36 = vld [vmem:[#allocation5 + $0x40] sm:$0xff] }
  0x34   :  { %125 = vmatpush1.msra.mxu0 %v90_v12  ;;  %381 = vmatprep.subr.mxu1 %v223_v25  ;;  %v205_v35 = vld [vmem:[#allocation7 + $0x50] sm:$0xff]  ;;  %v220_v37 = vld [vmem:[#allocation7 + $0xc8] sm:$0xff]  ;;  %v77_v38 = vld [vmem:[#allocation5 + $0x38] sm:$0xff] }
  0x35   :  { %126 = vmatprep.subr.mxu0 %v89_v13  ;;  %382 = vmatpush3.msra.mxu1 %v207_v27  ;;  %v204_v39 = vld [vmem:[#allocation7 + $0x48] sm:$0xff]  ;;  %v76_v40 = vld [vmem:[#allocation5 + $0x30] sm:$0xff]  ;;  %v219_v41 = vld [vmem:[#allocation7 + $0xc0] sm:$0xff] }
  0x36   :  { %127 = vmatpush1.msra.mxu0 %v88_v14  ;;  %383 = vmatprep.subr.mxu1 %v222_v29  ;;  %v75_v42 = vld [vmem:[#allocation5 + $0x28] sm:$0xff]  ;;  %v203_v43 = vld [vmem:[#allocation7 + $0x40] sm:$0xff]  ;;  %v218_v45 = vld [vmem:[#allocation7 + $0xb8] sm:$0xff] }
  0x37   :  { %128 = vmatprep.subr.mxu0 %v87_v17  ;;  %384 = vmatpush3.msra.mxu1 %v206_v31  ;;  %v74_v44 = vld [vmem:[#allocation5 + $0x20] sm:$0xff]  ;;  %v73_v46 = vld [vmem:[#allocation5 + $0x18] sm:$0xff]  ;;  %v72_v48 = vld [vmem:[#allocation5 + $0x10] sm:$0xff] }
  0x38   :  { %129 = vmatpush1.msra.mxu0 %v86_v20  ;;  %385 = vmatprep.subr.mxu1 %v221_v33  ;;  %v202_v47 = vld [vmem:[#allocation7 + $0x38] sm:$0xff]  ;;  %v217_v49 = vld [vmem:[#allocation7 + $0xb0] sm:$0xff]  ;;  %v71_v50 = vld [vmem:[#allocation5 + $0x8] sm:$0xff] }
  0x39   :  { %130 = vmatprep.subr.mxu0 %v85_v22  ;;  %386 = vmatpush3.msra.mxu1 %v205_v35  ;;  %v201_v51 = vld [vmem:[#allocation7 + $0x30] sm:$0xff]  ;;  %v70_v52 = vld [vmem:[#allocation5] sm:$0xff]  ;;  %v216_v53 = vld [vmem:[#allocation7 + $0xa8] sm:$0xff] }
  0x3a   :  { %131 = vmatpush1.msra.mxu0 %v84_v24  ;;  %387 = vmatprep.subr.mxu1 %v220_v37  ;;  %v577_v54 = vld [vmem:[#allocation2] sm:$0xff]  ;;  %v200_v55 = vld [vmem:[#allocation7 + $0x28] sm:$0xff]  ;;  %v215_v56 = vld [vmem:[#allocation7 + $0xa0] sm:$0xff] }
  0x3b   :  { %132 = vmatprep.subr.mxu0 %v83_v26  ;;  %388 = vmatpush3.msra.mxu1 %v204_v39  ;;  %v199_v57 = vld [vmem:[#allocation7 + $0x20] sm:$0xff]  ;;  %v69_v58 = vld [vmem:[#allocation2 + $0x8] sm:$0xff]  ;;  %v213_v61 = vld [vmem:[#allocation7 + $0x90] sm:$0xff] }
  0x3c   :  { %133 = vmatpush1.msra.mxu0 %v82_v28  ;;  %389 = vmatprep.subr.mxu1 %v219_v41  ;;  %v214_v59 = vld [vmem:[#allocation7 + $0x98] sm:$0xff]  ;;  %v197_v62 = vld [vmem:[#allocation7 + $0x10] sm:$0xff]  ;;  %v212_v63 = vld [vmem:[#allocation7 + $0x88] sm:$0xff] }
  0x3d   :  { %134 = vmatprep.subr.mxu0 %v81_v30  ;;  %390 = vmatpush3.msra.mxu1 %v203_v43  ;;  %v198_v60 = vld [vmem:[#allocation7 + $0x18] sm:$0xff]  ;;  %v196_v1 = vld [vmem:[#allocation7 + $0x8] sm:$0xff]  ;;  %v211_v2 = vld [vmem:[#allocation7 + $0x80] sm:$0xff] }
  0x3e   :  { %135 = vmatpush1.msra.mxu0 %v80_v32  ;;  %391 = vmatprep.subr.mxu1 %v218_v45  ;;  %v195_v3 = vld [vmem:[#allocation7] sm:$0xff]  ;;  %v102_v6 = vld [vmem:[%s602_s2] sm:$0x3] }
  0x3f   :  { %136 = vmatprep.subr.mxu0 %v79_v34  ;;  %392 = vmatpush3.msra.mxu1 %v202_v47  ;;  %v372_v23 = vld [vmem:[%s604_s4] ss:$0 sm:$0xff] }
  0x40   :  { %137 = vmatpush1.msra.mxu0 %v78_v36  ;;  %393 = vmatprep.subr.mxu1 %v217_v49 }
  0x41   :  { %138 = vmatprep.subr.mxu0 %v77_v38  ;;  %394 = vmatpush3.msra.mxu1 %v201_v51 }
  0x42   :  { %139 = vmatpush1.msra.mxu0 %v76_v40  ;;  %395 = vmatprep.subr.mxu1 %v216_v53 }
  0x43   :  { %140 = vmatprep.subr.mxu0 %v75_v42  ;;  %396 = vmatpush3.msra.mxu1 %v200_v55 }
  0x44   :  { %141 = vmatpush1.msra.mxu0 %v74_v44  ;;  %397 = vmatprep.subr.mxu1 %v215_v56 }
  0x45   :  { %142 = vmatprep.subr.mxu0 %v73_v46  ;;  %398 = vmatpush3.msra.mxu1 %v199_v57 }
  0x46   :  { %143 = vmatpush1.msra.mxu0 %v72_v48  ;;  %399 = vmatprep.subr.mxu1 %v214_v59  ;;  %v373_v48 = vld [vmem:[%s605_s5] ss:$0 sm:$0xff] }
  0x47   :  { %144 = vmatprep.subr.mxu0 %v71_v50  ;;  %400 = vmatpush3.msra.mxu1 %v198_v60  ;;  %v374_v50 = vld [vmem:[%s606_s6] ss:$0 sm:$0xff] }
  0x48   :  { %145 = vmatpush1.msra.mxu0 %v70_v52  ;;  %401 = vmatprep.subr.mxu1 %v213_v61 }
  0x49   :  { %179 = vmatmul.mubr.f32.vlgmr.msra.gmra.mxu0 %v577_v54  ;;  %402 = vmatpush3.msra.mxu1 %v197_v62 }
  0x4a   :  { %184 = vmatprep.mubr.f32.mxu0 %v519_v0  ;;  %403 = vmatprep.subr.mxu1 %v212_v63  ;;  %v104_v0 = vlaneseq }
  0x4b   :  { %404 = vmatpush3.msra.mxu1 %v196_v1 }
  0x4c   :  { %405 = vmatprep.subr.mxu1 %v211_v2  ;;  %v105_v4 = vshrl.u32 %v104_v0, 7 }
  0x4d   :  { %185 = vmatmul.mubr.f32.gmra.mxu0 %v69_v58  ;;  %406 = vmatpush3.msra.mxu1 %v195_v3 }
  0x4e   :  { %v106_v5 = vsub.s32 0, %v105_v4  ;;  %v110_v7 = vsub.s32 1, %v105_v4 }
  0x50   :  { %v107_v8 = vrot.slane %v102_v6, %v106_v5  ;;  %v111_v9 = vrot.slane %v102_v6, %v110_v7 }
 0x109   :  { %v180_v10 = vpop.f32.mrf.mxu0 }
 0x10a   :  { %v181_v11 = vadd.f32 %v180_v10, %v107_v8 }
 0x10b   :  { %v182_v12 = vpop.f32.mrf.mxu0 }
 0x10c   :  { %v183_v13 = vadd.f32 %v182_v12, %v111_v9  ;;  %v191_v16 = vmax.f32 %v181_v11, 0.0 }
 0x10d   :  { %v186_v14 = vpop.f32.mrf.mxu0 }
 0x10e   :  { %v192_v15 = vmax.f32 %v183_v13, 0.0  ;;  %v187_v17 = vadd.f32 %v186_v14, %v107_v8 }
 0x10f   :  { %v188_v18 = vpop.f32.mrf.mxu0 }
 0x110   :  { %v189_v19 = vadd.f32 %v188_v18, %v111_v9  ;;  %298 = vmatprep.mubr.f32.mxu1 %v192_v15  ;;  %v193_v21 = vmax.f32 %v187_v17, 0.0 }
 0x111   :  { %299 = vmatmul.mubr.f32.vlgmr.msra.gmra.mxu1 %v191_v16 }
 0x112   :  { %v194_v20 = vmax.f32 %v189_v19, 0.0 }
 0x114   :  { %303 = vmatprep.mubr.f32.mxu1 %v194_v20 }
 0x115   :  { %304 = vmatmul.mubr.f32.gmra.mxu1 %v193_v21 }
 0x1d1   :  { %v407_v22 = vpop.f32.mrf.mxu1 }
 0x1d3   :  { %v408_v24 = vpop.f32.mrf.mxu1 }
 0x1d4   :  { %v409_v25 = vadd.f32 %v408_v24, %v407_v22 }
 0x1d5   :  { %v410_v26 = vpop.f32.mrf.mxu1 }
 0x1d6   :  { %v301_v27 = vadd.f32 %v409_v25, %v372_v23 }
 0x1d7   :  { %v411_v28 = vpop.f32.mrf.mxu1 }
 0x1d8   :  { %v412_v29 = vadd.f32 %v411_v28, %v410_v26  ;;  %v309_v30 = vadd.f32 %v301_v27, %v577_v54 }
 0x1da   :  { %v306_v31 = vadd.f32 %v412_v29, %v372_v23  ;;  %311 = vadd.xlane.f32.xlu0 %v309_v30 }
 0x1dc   :  { %v310_v32 = vadd.f32 %v306_v31, %v69_v58 }
 0x1de   :  { %313 = vadd.xlane.f32.xlu0 %v310_v32 }
 0x263   :  { %v312_v33 = vpop.xlane.xlu0 %311 }
 0x264   :  { %v316_v34 = vmul.f32 0.0078125, %v312_v33 }
 0x266   :  { %v318_v35 = vsub.f32 %v309_v30, %v316_v34 }
 0x267   :  { %v314_v36 = vpop.xlane.xlu0 %313 }
 0x268   :  { %v317_v37 = vmul.f32 0.0078125, %v314_v36  ;;  %v320_v38 = vmul.f32 %v318_v35, %v318_v35 }
 0x26a   :  { %v319_v39 = vsub.f32 %v310_v32, %v317_v37  ;;  %322 = vadd.xlane.f32.xlu1 %v320_v38 }
 0x26c   :  { %v321_v40 = vmul.f32 %v319_v39, %v319_v39 }
 0x26e   :  { %324 = vadd.xlane.f32.xlu1 %v321_v40 }
 0x2f3   :  { %v323_v41 = vpop.xlane.xlu1 %322 }
 0x2f4   :  { %v326_v42 = vmul.f32 0.0078125, %v323_v41 }
 0x2f6   :  { %v328_v43 = vadd.f32 1e-06, %v326_v42 }
 0x2f7   :  { %v325_v44 = vpop.xlane.xlu1 %324 }
 0x2f8   :  { %422 = vrsqrt.f32 %v328_v43  ;;  %v327_v45 = vmul.f32 0.0078125, %v325_v44 }
 0x2fa   :  { %v329_v46 = vadd.f32 1e-06, %v327_v45 }
 0x2fc   :  { %424 = vrsqrt.f32 %v329_v46 }
 0x305   :  { %v423_v47 = vpop.eup %422 }
 0x306   :  { %v332_v49 = vmul.f32 %v423_v47, %v318_v35 }
 0x308   :  { %v341_v51 = vmul.f32 %v373_v48, %v332_v49 }
 0x309   :  { %v425_v52 = vpop.eup %424 }
 0x30a   :  { %v333_v53 = vmul.f32 %v425_v52, %v319_v39  ;;  %v350_v54 = vadd.f32 %v374_v50, %v341_v51 }
 0x30c   :  { %v342_v55 = vmul.f32 %v373_v48, %v333_v53  ;;  %352 = vst [vmem:[#allocation8] sm:$0xff] %v350_v54 }
 0x30e   :  { %v351_v56 = vadd.f32 %v374_v50, %v342_v55 }
 0x310   :  { %353 = vst [vmem:[#allocation8 + $0x8] sm:$0xff] %v351_v56 }
 0x311   :  { %497 = shalt.err (!%p494_p5)
}
 0x312   :  { %365 = dma.vmem_to_hbm [thread:$0]  %s360_s24, 256, %s607_s7, [#allocation4], %s516_s11, %s516_s11, %s517_s12  }
 0x313   :  { %510 = dma.done.wait [#allocation4], 256  }
 0x314   :  { %511 = vsyncadd [#allocation4], 4294967040 }
 0x315   :  { %369 = vsyncpa [#allocation3], 1 }
 0x316   :  { %370 = vsyncpa [#allocation6], 1 }
 0x317   :  { %371 = vsyncpa [#allocation4], 1 }

</bundles_post_ra>
